<compile_context>
chip_gen: v7x
topology: tpu7x:2x2x1
jax: 0.10.0
libtpu: 0.0.40
codegen_flags: <defaults>
</compile_context>

<pallas_src>
import functools

import jax
import jax.numpy as jnp
from jax import lax
from jax.experimental import pallas as pl
from jax.experimental.pallas import tpu as pltpu

_LANES = 128
_MAX_TILE_ROWS = 1024  # 1024 x 128 x 4B = 512 KiB per buffer


def _clip_boxes_kernel(boxes_ref, out_ref, *, width, height):
    # boxes_ref / out_ref: VMEM (tile_rows, 128) lane-dense tile of the
    # flattened boxes. Flat index % 4 == lane % 4 selects the coordinate:
    #   0 -> x1 (>= 0), 1 -> y1 (>= 0), 2 -> x2 (<= width), 3 -> y2 (<= height).
    b = boxes_ref[...]
    dt = b.dtype

    col = lax.broadcasted_iota(jnp.int32, b.shape, dimension=b.ndim - 1) % 4

    zero = jnp.zeros((), dt)
    neg_inf = jnp.array(-jnp.inf, dt)
    pos_inf = jnp.array(jnp.inf, dt)
    w = jnp.array(width, dt)
    h = jnp.array(height, dt)

    lo = jnp.where(col < 2, zero, neg_inf)
    hi = jnp.where(col == 2, w, jnp.where(col == 3, h, pos_inf))

    out_ref[...] = jnp.minimum(jnp.maximum(b, lo), hi)


def _round_up(x: int, m: int) -> int:
    return -(-x // m) * m


def _choose_tiling(rows: int):
    """Pick (tile_rows, padded_rows, num_tiles) that splits rows ~evenly.

    tile_rows is a multiple of 8 (sublane), capped at _MAX_TILE_ROWS, and the
    total row padding is < 8 * num_tiles (negligible HBM overhead).
    """
    rows8 = max(8, _round_up(rows, 8))
    num_tiles = -(-rows8 // _MAX_TILE_ROWS)          # cdiv
    tile_rows = _round_up(-(-rows8 // num_tiles), 8)  # even split, sublane-aligned
    padded_rows = num_tiles * tile_rows
    return tile_rows, padded_rows, num_tiles


def clip_boxes(boxes: jax.Array, img: jax.Array) -> jax.Array:
    """Pallas equivalent of ClipBoxes.forward(boxes, img).

    boxes: (B, N, 4) float array, last axis = [x1, y1, x2, y2].
    img:   (B, C, H, W) array (NCHW); only its shape is used.
    """
    batch, num_boxes, four = boxes.shape
    assert four == 4, "boxes last dim must be 4"
    _, _, height, width = img.shape

    total = batch * num_boxes * 4
    rows = -(-total // _LANES)                        # cdiv
    tile_rows, padded_rows, num_tiles = _choose_tiling(rows)
    padded_total = padded_rows * _LANES

    # Lane-dense slab: (padded_rows, 128). Pad region is clamped too and then
    # sliced off, so its contents are irrelevant.
    flat = boxes.reshape(-1)
    if padded_total != total:
        flat = jnp.pad(flat, (0, padded_total - total))
    slab = flat.reshape(padded_rows, _LANES)

    kernel = functools.partial(
        _clip_boxes_kernel, width=float(width), height=float(height)
    )

    out = pl.pallas_call(
        kernel,
        out_shape=jax.ShapeDtypeStruct((padded_rows, _LANES), boxes.dtype),
        grid=(num_tiles,),
        in_specs=[pl.BlockSpec((tile_rows, _LANES), lambda i: (i, 0))],
        out_specs=pl.BlockSpec((tile_rows, _LANES), lambda i: (i, 0)),
        input_output_aliases={0: 0},
        compiler_params=pltpu.CompilerParams(
            dimension_semantics=("parallel",)
        ),
    )(slab)

    return out.reshape(-1)[:total].reshape(batch, num_boxes, 4)


def _clip_boxes_ref(boxes, img):
    """Pure-JAX reference matching the PyTorch semantics."""
    _, _, height, width = img.shape
    x1 = jnp.maximum(boxes[:, :, 0], 0.0)
    y1 = jnp.maximum(boxes[:, :, 1], 0.0)
    x2 = jnp.minimum(boxes[:, :, 2], float(width))
    y2 = jnp.minimum(boxes[:, :, 3], float(height))
    return jnp.stack([x1, y1, x2, y2], axis=-1)


if __name__ == "__main__":
    key = jax.random.PRNGKey(0)
    k_boxes, k_img = jax.random.split(key)

    B, N = 2, 8           # batch, num boxes
    C, H, W = 4, 16, 16   # img channels / spatial (NCHW)

    # Boxes spread well outside [0, W] x [0, H] so clamping actually fires.
    boxes = jax.random.uniform(
        k_boxes, (B, N, 4), dtype=jnp.float32, minval=-10.0, maxval=30.0
    )
    img = jax.random.normal(k_img, (B, C, H, W), dtype=jnp.float32)

    out = clip_boxes(boxes, img)
    out = jax.block_until_ready(out)

    ref = _clip_boxes_ref(boxes, img)
    assert out.shape == boxes.shape and out.dtype == boxes.dtype
    assert jnp.allclose(out, ref), "Pallas output mismatch vs reference"

    # Also exercise a larger, non-tile-aligned box count (multi-tile grid path).
    boxes2 = jax.random.uniform(
        jax.random.PRNGKey(1), (2, 50000, 4), dtype=jnp.float32,
        minval=-10.0, maxval=30.0
    )
    out2 = jax.block_until_ready(clip_boxes(boxes2, img))
    assert jnp.allclose(out2, _clip_boxes_ref(boxes2, img))

    print("KERNEL_OK")
</pallas_src>

<mosaic_0001>
module attributes {stable_mosaic.version = 11 : i64} {
  func.func @_clip_boxes_kernel(%arg0: i32, %arg1: memref<8x128xf32, #tpu.memory_space<vmem>>, %arg2: memref<8x128xf32, #tpu.memory_space<vmem>>) attributes {dimension_semantics = [#tpu.dimension_semantics<parallel>], iteration_bounds = array<i64: 1>, scalar_prefetch = 0 : i64, scratch_operands = 0 : i64, tpu.core_type = #tpu.core_type<tc>, window_params = [{transform_indices = @transform_0, window_bounds = array<i64: 8, 128>}, {transform_indices = @transform_1, window_bounds = array<i64: 8, 128>}]} {
    %c0 = arith.constant 0 : index
    %c0_0 = arith.constant 0 : index
    %0 = vector.load %arg1[%c0, %c0_0] : memref<8x128xf32, #tpu.memory_space<vmem>>, vector<8x128xf32>
    %1 = tpu.iota {dimensions = array<i32: 1>} : vector<8x128xi32>
    %c4_i32 = arith.constant 4 : i32
    %c0_i32 = arith.constant 0 : i32
    %2 = arith.cmpi eq, %c4_i32, %c0_i32 : i32
    %c1_i32 = arith.constant 1 : i32
    %3 = arith.select %2, %c1_i32, %c4_i32 : i32
    %4 = vector.broadcast %3 : i32 to vector<8x128xi32>
    %5 = arith.remsi %1, %4 : vector<8x128xi32>
    %c0_i32_1 = arith.constant 0 : i32
    %6 = vector.broadcast %c0_i32_1 : i32 to vector<8x128xi32>
    %7 = arith.cmpi ne, %5, %6 : vector<8x128xi32>
    %c0_i32_2 = arith.constant 0 : i32
    %8 = vector.broadcast %c0_i32_2 : i32 to vector<8x128xi32>
    %9 = arith.cmpi slt, %5, %8 : vector<8x128xi32>
    %c0_i32_3 = arith.constant 0 : i32
    %10 = arith.cmpi slt, %3, %c0_i32_3 : i32
    %11 = vector.broadcast %10 : i1 to vector<8x128xi1>
    %12 = vector.broadcast %11 : vector<8x128xi1> to vector<8x128xi1>
    %13 = arith.xori %9, %12 : vector<8x128xi1>
    %14 = arith.andi %13, %7 : vector<8x128xi1>
    %15 = vector.broadcast %3 : i32 to vector<8x128xi32>
    %16 = arith.addi %5, %15 : vector<8x128xi32>
    %17 = arith.select %14, %16, %5 : vector<8x128xi1>, vector<8x128xi32>
    %c2_i32 = arith.constant 2 : i32
    %18 = vector.broadcast %c2_i32 : i32 to vector<8x128xi32>
    %19 = arith.cmpi slt, %17, %18 : vector<8x128xi32>
    %cst = arith.constant 0.000000e+00 : f32
    %cst_4 = arith.constant 0xFF800000 : f32
    %20 = vector.broadcast %cst : f32 to vector<8x128xf32>
    %21 = vector.broadcast %cst_4 : f32 to vector<8x128xf32>
    %22 = arith.select %19, %20, %21 : vector<8x128xi1>, vector<8x128xf32>
    %c2_i32_5 = arith.constant 2 : i32
    %23 = vector.broadcast %c2_i32_5 : i32 to vector<8x128xi32>
    %24 = arith.cmpi eq, %17, %23 : vector<8x128xi32>
    %c3_i32 = arith.constant 3 : i32
    %25 = vector.broadcast %c3_i32 : i32 to vector<8x128xi32>
    %26 = arith.cmpi eq, %17, %25 : vector<8x128xi32>
    %cst_6 = arith.constant 1.600000e+01 : f32
    %cst_7 = arith.constant 0x7F800000 : f32
    %27 = vector.broadcast %cst_6 : f32 to vector<8x128xf32>
    %28 = vector.broadcast %cst_7 : f32 to vector<8x128xf32>
    %29 = arith.select %26, %27, %28 : vector<8x128xi1>, vector<8x128xf32>
    %cst_8 = arith.constant 1.600000e+01 : f32
    %30 = vector.broadcast %cst_8 : f32 to vector<8x128xf32>
    %31 = arith.select %24, %30, %29 : vector<8x128xi1>, vector<8x128xf32>
    %32 = arith.maximumf %0, %22 : vector<8x128xf32>
    %33 = arith.minimumf %32, %31 : vector<8x128xf32>
    %c0_9 = arith.constant 0 : index
    %c0_10 = arith.constant 0 : index
    %34 = vector.load %arg2[%c0_9, %c0_10] : memref<8x128xf32, #tpu.memory_space<vmem>>, vector<8x128xf32>
    tpu.vector_store %arg2[%c0_9, %c0_10], %33 {strides = array<i32>} : memref<8x128xf32, #tpu.memory_space<vmem>>, vector<8x128xf32>,
    return
  }
  func.func @transform_0(%arg0: i32) -> (i32, i32) {
    %c0_i32 = arith.constant 0 : i32
    %c0_i32_0 = arith.constant 0 : i32
    return %arg0, %c0_i32 : i32, i32
  }
  func.func @transform_1(%arg0: i32) -> (i32, i32) {
    %c0_i32 = arith.constant 0 : i32
    %c0_i32_0 = arith.constant 0 : i32
    return %arg0, %c0_i32 : i32, i32
  }
}

</mosaic_0001>

<bundles_post_ra>
// kernel: tpu_custom_call.1
= control target key start
LH: loop header
LB: loop body
LE: loop exit
PB: predicated region body
PF: predicated region fallthrough
CT: control target
= control target key end

     0   :  { %6 = vsyncpa [#allocation3], 0  ;;  %s150_s0 = inlined_call_operand.hbm [shape: f32[8,128], index: 0, kind: input, shape index: {}, may-alias: {0,1}]   ;;  %s151_s1 = inlined_call_operand.hbm [shape: f32[8,128], index: 1, kind: output, shape index: {}, may-alias: {0,1}]  }
   0x1   :  { %7 = vsyncpa [#allocation4], 0  ;;  %s112_s6 = smov [#allocation2]   ;;  %s64_s10 = scalar_lea.hbm %s150_s0, 128 }
   0x2   :  { %s14_s7 = sshll.u32 %s112_s6, 4  ;;  %p65_p0 = scmp.ne.s32.totalorder %s150_s0, %s64_s10  ;;  %s15_s7 = int_to_ptr.vmem [resolvable:$true] %s14_s7 }
   0x3   :  { %p68_p1 = scmp.lt.u32.totalorder %s64_s10, %s150_s0 }
   0x5   :  { %p70_p2 = pnand %p68_p1, %p65_p0 }
   0x7   :  { %73 = shalt.err (!%p70_p2)
}
   0x8   :  { %s74_s15 = scalar_lea.vmem %s15_s7, 128  ;;  %p79_p4 = scmp.lt.s32.totalorder %s15_s7, %s15_s7 }
   0x9   :  { %p75_p3 = scmp.ne.s32.totalorder %s15_s7, %s74_s15  ;;  %p80_p5 = scmp.lt.s32.totalorder %s74_s15, %s74_s15 }
   0xb   :  { %p81_p6 = por %p80_p5, %p79_p4 }
   0xd   :  { %p82_p7 = pnand %p81_p6, %p75_p3 }
   0xf   :  { %85 = shalt.err (!%p82_p7)
}
  0x10   :  { %17 = dma.hbm_to_vmem [thread:$0]  %s150_s0, 128, %s15_s7, [#allocation3]  }
  0x11   :  { %108 = dma.done.wait [#allocation3], 128  }
  0x12   :  { %109 = vsyncadd [#allocation3], 4294967168  ;;  %v22_v0 = vlaneseq  ;;  %v21_v3 = vld [vmem:[#allocation2] sm:$0xff]  ;;  %v113_v4 = vmov -inf   ;;  %v114_v6 = vmov inf   ;;  %s115_s18 = smov [#allocation5]  }
  0x13   :  { %s51_s19 = sshll.u32 %s115_s18, 4  ;;  %s52_s19 = int_to_ptr.vmem [resolvable:$true] %s51_s19 }
  0x14   :  { %v23_v1 = vand.u32 127, %v22_v0  ;;  %s86_s0 = scalar_lea.vmem %s52_s19, 128  ;;  %p91_p9 = scmp.lt.s32.totalorder %s52_s19, %s52_s19 }
  0x15   :  { %p87_p8 = scmp.ne.s32.totalorder %s52_s19, %s86_s0  ;;  %p92_p10 = scmp.lt.s32.totalorder %s86_s0, %s86_s0 }
  0x16   :  { %v28_v2 = vand.u32 3, %v23_v1 }
  0x17   :  { %p93_p11 = por %p92_p10, %p91_p9 }
  0x18   :  { %vm36_vm0 = vcmp.lt.s32.totalorder %v28_v2, 2  ;;  %vm38_vm1 = vcmp.eq.s32.totalorder %v28_v2, 2  ;;  %vm39_vm2 = vcmp.eq.s32.totalorder %v28_v2, 3 }
  0x19   :  { %v37_v5 = vsel %vm36_vm0, 0.0, %v113_v4  ;;  %v40_v7 = vsel %vm39_vm2, 16.0, %v114_v6  ;;  %p94_p12 = pnand %p93_p11, %p87_p8 }
  0x1a   :  { %v41_v8 = vsel %vm38_vm1, 16.0, %v40_v7  ;;  %v42_v9 = vmax.f32 %v21_v3, %v37_v5 }
  0x1c   :  { %v43_v10 = vmin.f32 %v42_v9, %v41_v8 }
  0x1e   :  { %44 = vst [vmem:[#allocation5] sm:$0xff] %v43_v10 }
  0x1f   :  { %97 = shalt.err (!%p94_p12)
}
  0x20   :  { %s98_s22 = scalar_lea.hbm %s151_s1, 128 }
  0x21   :  { %p99_p13 = scmp.ne.s32.totalorder %s151_s1, %s98_s22  ;;  %p102_p0 = scmp.lt.u32.totalorder %s98_s22, %s151_s1 }
  0x23   :  { %p104_p1 = pnand %p102_p0, %p99_p13 }
  0x25   :  { %107 = shalt.err (!%p104_p1)
}
  0x26   :  { %54 = dma.vmem_to_hbm [thread:$0]  %s52_s19, 128, %s151_s1, [#allocation4]  }
  0x27   :  { %110 = dma.done.wait [#allocation4], 128  }
  0x28   :  { %111 = vsyncadd [#allocation4], 4294967168 }
  0x29   :  { %58 = vsyncpa [#allocation3], 1 }
  0x2a   :  { %59 = vsyncpa [#allocation4], 1 }

</bundles_post_ra>
